<compile_context>
chip_gen: v7x
topology: tpu7x:2x2x1
jax: 0.10.0
libtpu: 0.0.40
codegen_flags: <defaults>
</compile_context>

<pallas_src>
import functools
import math

import jax
import jax.numpy as jnp
from jax.experimental import pallas as pl
from jax.experimental.pallas import tpu as pltpu


def arcnegface_kernel(x_ref, w_ref, wt_ref, label_ref, out_ref, *,
                      scale, cos_m, sin_m, thresh, mm, alpha, sigma,
                      matmul_dtype):
    # x_ref:     (TB, D)  f32   batch tile of inputs
    # w_ref:     (TC, D)  f32   class tile of raw weights (reused across batch tiles)
    # wt_ref:    (TB, D)  f32   gathered target-class weight rows w[label]
    # label_ref: (TB, 1)  i32   labels for this batch tile
    # out_ref:   (TB, TC) f32   logits tile
    eps2 = 1e-24                       # (F.normalize eps = 1e-12) ** 2

    x = x_ref[...]
    xn = x * jax.lax.rsqrt(jnp.maximum(
        jnp.sum(x * x, axis=-1, keepdims=True), eps2))               # (TB, D)

    w = w_ref[...]                                                   # (TC, D)
    # Row norms of the weight tile, produced directly as a lane-major (1, TC)
    # row via a ones-row MXU reduction: avoids materializing a normalized copy
    # of W and avoids a (TC, 1) -> (1, TC) transpose.
    ones_rows = jnp.ones((8, w.shape[1]), jnp.float32)
    w_sq8 = jax.lax.dot_general(ones_rows, w * w, (((1,), (1,)), ((), ())),
                                preferred_element_type=jnp.float32)  # (8, TC)
    inv_wn = jax.lax.rsqrt(jnp.maximum(w_sq8[0:1, :], eps2))         # (1, TC)

    # Cosine similarity tile on the MXU: (TB, D) @ (TC, D)^T, columns scaled by
    # 1/||w|| after the matmul instead of normalizing W up front.
    dot = jax.lax.dot_general(xn.astype(matmul_dtype), w.astype(matmul_dtype),
                              (((1,), (1,)), ((), ())),
                              preferred_element_type=jnp.float32)    # (TB, TC)
    cos = dot * inv_wn                                               # (TB, TC)

    # Target-class cosine / margin term from the gathered w[label] rows (f32);
    # independent of the class tiling, so every (b, c) tile sees the same a_t.
    wt = wt_ref[...]
    wt_n = wt * jax.lax.rsqrt(jnp.maximum(
        jnp.sum(wt * wt, axis=-1, keepdims=True), eps2))             # (TB, D)
    cos_t = jnp.sum(xn * wt_n, axis=-1, keepdims=True)               # (TB, 1)
    sin_t = jnp.sqrt(jnp.maximum(1.0 - cos_t * cos_t, 0.0))
    # if cos_t > thresh: cos(acos(cos_t)+m) = cos_t*cos(m) - sin_t*sin(m)
    # else:              cos_t - mm
    a_t = jnp.where(cos_t > thresh, cos_t * cos_m - sin_t * sin_m, cos_t - mm)

    tb, tc = out_ref.shape
    col0 = pl.program_id(0) * tc                                     # global class offset
    cls = col0 + jax.lax.broadcasted_iota(jnp.int32, (tb, tc), 1)
    onehot = cls == label_ref[...]                                   # (TB, TC)

    # Gaussian re-weighting of non-target logits.
    diff = cos - a_t
    t_scale = alpha * jnp.exp(-(diff * diff) * (1.0 / sigma))
    others = t_scale * cos + t_scale - 1.0
    out_ref[...] = (scale * jnp.where(onehot, a_t, others)).astype(out_ref.dtype)


def _pick_tile(total, preferred, align):
    """Largest multiple of `align` that divides `total` and is <= preferred,
    falling back to `total` (single full-extent tile) if none exists."""
    if total <= preferred:
        return total
    cand = (preferred // align) * align
    while cand >= align:
        if total % cand == 0:
            return cand
        cand -= align
    return total


def arcnegface(x, weight, label, *, scale=64.0, margin=0.5,
               alpha=1.2, sigma=2.0, matmul_dtype=jnp.bfloat16,
               block_b=None, block_c=None):
    """ArcNegFace forward (easy_margin=False path). Returns {'logits': (B, C)}.

    Use matmul_dtype=jnp.float32 on v5e (no bf16 throughput win there) or when
    tight numerical agreement with an f32 reference is required.
    """
    B, D = x.shape
    C, D2 = weight.shape
    assert D == D2
    assert label.shape == (B,)

    thresh = math.cos(math.pi - margin)
    mm = math.sin(math.pi - margin) * margin
    cos_m = math.cos(margin)
    sin_m = math.sin(margin)

    # Batch tile: multiple of 8 sublanes; class tile: multiple of 128 lanes
    # (lane-dense output blocks lower to unmasked stores).
    TB = block_b if block_b is not None else _pick_tile(B, 256, 8)
    TC = block_c if block_c is not None else _pick_tile(C, 512, 128)
    assert B % TB == 0 and C % TC == 0
    nb, nc = B // TB, C // TC

    x = x.astype(jnp.float32)
    weight = weight.astype(jnp.float32)
    label_i = label.astype(jnp.int32)
    label2d = label_i.reshape(B, 1)
    # "Small first pass": gather the target-class weight rows once so the margin
    # term a_t is independent of the class tiling inside the kernel.
    w_tgt = jnp.take(weight, label_i, axis=0)                        # (B, D)

    kernel = functools.partial(
        arcnegface_kernel,
        scale=float(scale), cos_m=float(cos_m), sin_m=float(sin_m),
        thresh=float(thresh), mm=float(mm),
        alpha=float(alpha), sigma=float(sigma),
        matmul_dtype=matmul_dtype,
    )

    # Double-buffered f32 working set: weight tile + x / w_tgt / label / out tiles
    # (label block pads to 128 lanes). Keep under the v7x-safe 48 MiB ceiling.
    fp = 4
    est = 2 * fp * (TC * D + 2 * TB * D + TB * 128 + TB * TC)
    vmem_limit = int(min(max(2 * est, 32 * 1024 * 1024), 48 * 1024 * 1024))

    logits = pl.pallas_call(
        kernel,
        out_shape=jax.ShapeDtypeStruct((B, C), jnp.float32),
        grid_spec=pltpu.PrefetchScalarGridSpec(
            num_scalar_prefetch=0,
            # Class tiles outer, batch tiles inner: the weight block index
            # depends only on c, so each weight tile is DMA'd once and reused
            # across all batch tiles.
            grid=(nc, nb),
            in_specs=[
                pl.BlockSpec((TB, D), lambda c, b: (b, 0)),   # input rows
                pl.BlockSpec((TC, D), lambda c, b: (c, 0)),   # weight tile (reused over b)
                pl.BlockSpec((TB, D), lambda c, b: (b, 0)),   # gathered w[label] rows
                pl.BlockSpec((TB, 1), lambda c, b: (b, 0)),   # labels
            ],
            out_specs=pl.BlockSpec((TB, TC), lambda c, b: (b, c)),
        ),
        compiler_params=pltpu.CompilerParams(
            # No cross-step dependencies: both axes can shard across v7x's 2 TCs.
            dimension_semantics=("parallel", "parallel"),
            vmem_limit_bytes=vmem_limit,
        ),
    )(x, weight, w_tgt, label2d)
    return {"logits": logits}


def arcnegface_ref(x, weight, label, *, scale=64.0, margin=0.5,
                   alpha=1.2, sigma=2.0):
    # Pure-JAX reference mirroring the PyTorch forward (easy_margin=False path).
    thresh = math.cos(math.pi - margin)
    mm = math.sin(math.pi - margin) * margin
    eps = 1e-12
    xn = x / jnp.maximum(jnp.linalg.norm(x, axis=-1, keepdims=True), eps)
    wn = weight / jnp.maximum(jnp.linalg.norm(weight, axis=-1, keepdims=True), eps)
    cos = xn @ wn.T
    B, C = cos.shape
    onehot = jax.nn.one_hot(label, C, dtype=jnp.bool_)
    cos_t = jnp.sum(jnp.where(onehot, cos, 0.0), axis=-1, keepdims=True)
    a_t = jnp.where(cos_t > thresh,
                    jnp.cos(jnp.arccos(jnp.clip(cos_t, -1.0, 1.0)) + margin),
                    cos_t - mm)
    t_scale = alpha * jnp.exp(-((cos - a_t) ** 2) / sigma)
    others = t_scale * cos + t_scale - 1.0
    return scale * jnp.where(onehot, a_t, others)


# TODO(synk): the easy_margin=True branch of the PyTorch module is not implemented
# (module default is easy_margin=False, which is the path implemented here).

if __name__ == "__main__":
    in_features = 64
    out_features = 512
    batch = 16

    key = jax.random.PRNGKey(0)
    kx, kw, kl = jax.random.split(key, 3)

    x = jax.random.normal(kx, (batch, in_features), dtype=jnp.float32)
    # reset_parameters(): uniform(-stdv, stdv), stdv = 1/sqrt(in_features)
    stdv = 1.0 / math.sqrt(in_features)
    weight = jax.random.uniform(kw, (out_features, in_features),
                                minval=-stdv, maxval=stdv, dtype=jnp.float32)
    label = jax.random.randint(kl, (batch,), 0, out_features, dtype=jnp.int32)

    ref = arcnegface_ref(x, weight, label)

    # f32 MXU path (v5e-preferred). Small explicit tiles exercise the 2-D grid
    # (4 class tiles x 2 batch tiles) and the weight-tile reuse across batch.
    out_f32 = arcnegface(x, weight, label, matmul_dtype=jnp.float32,
                         block_b=8, block_c=128)
    logits_f32 = jax.block_until_ready(out_f32["logits"])
    assert logits_f32.shape == (batch, out_features)
    assert jnp.allclose(logits_f32, ref, atol=1e-2, rtol=1e-3), \
        float(jnp.max(jnp.abs(logits_f32 - ref)))

    # bf16-input MXU path (default; native rate on v6e/v7x). bf16 cosines carry
    # ~3 decimal digits, so the check is correspondingly looser.
    out_bf16 = arcnegface(x, weight, label, block_b=8, block_c=128)
    logits_bf16 = jax.block_until_ready(out_bf16["logits"])
    assert logits_bf16.shape == (batch, out_features)
    assert jnp.allclose(logits_bf16, ref, atol=2.5, rtol=5e-2), \
        float(jnp.max(jnp.abs(logits_bf16 - ref)))

    print("KERNEL_OK")
</pallas_src>

<mosaic_0001>
module attributes {stable_mosaic.version = 11 : i64} {
  func.func @arcnegface_kernel(%arg0: i32, %arg1: i32, %arg2: memref<8x64xf32, #tpu.memory_space<vmem>>, %arg3: memref<128x64xf32, #tpu.memory_space<vmem>>, %arg4: memref<8x64xf32, #tpu.memory_space<vmem>>, %arg5: memref<8x1xi32, #tpu.memory_space<vmem>>, %arg6: memref<8x128xf32, #tpu.memory_space<vmem>>) attributes {dimension_semantics = [#tpu.dimension_semantics<parallel>, #tpu.dimension_semantics<parallel>], iteration_bounds = array<i64: 4, 2>, scalar_prefetch = 0 : i64, scratch_operands = 0 : i64, tpu.core_type = #tpu.core_type<tc>, window_params = [{transform_indices = @transform_0, window_bounds = array<i64: 8, 64>}, {transform_indices = @transform_1, window_bounds = array<i64: 128, 64>}, {transform_indices = @transform_2, window_bounds = array<i64: 8, 64>}, {transform_indices = @transform_3, window_bounds = array<i64: 8, 1>}, {transform_indices = @transform_4, window_bounds = array<i64: 8, 128>}]} {
    %c0 = arith.constant 0 : index
    %c0_0 = arith.constant 0 : index
    %0 = vector.load %arg2[%c0, %c0_0] : memref<8x64xf32, #tpu.memory_space<vmem>>, vector<8x64xf32>
    %1 = arith.mulf %0, %0 : vector<8x64xf32>
    %cst = arith.constant dense<0.000000e+00> : vector<8xf32>
    %2 = vector.multi_reduction <add>, %1, %cst [1] : vector<8x64xf32> to vector<8xf32>
    %3 = vector.shape_cast %2 : vector<8xf32> to vector<8x1xf32>
    %cst_1 = arith.constant 1.000000e-24 : f32
    %4 = vector.broadcast %cst_1 : f32 to vector<8x1xf32>
    %5 = arith.maximumf %3, %4 : vector<8x1xf32>
    %6 = math.rsqrt %5 : vector<8x1xf32>
    %7 = vector.broadcast %6 : vector<8x1xf32> to vector<8x64xf32>
    %8 = arith.mulf %0, %7 : vector<8x64xf32>
    %c0_2 = arith.constant 0 : index
    %c0_3 = arith.constant 0 : index
    %9 = vector.load %arg3[%c0_2, %c0_3] : memref<128x64xf32, #tpu.memory_space<vmem>>, vector<128x64xf32>
    %cst_4 = arith.constant 1.000000e+00 : f32
    %10 = vector.broadcast %cst_4 : f32 to vector<8x64xf32>
    %11 = arith.mulf %9, %9 : vector<128x64xf32>
    %cst_5 = arith.constant dense<0.000000e+00> : vector<8x128xf32>
    %12 = tpu.matmul %10, %11, %cst_5 {dimension_numbers = #tpu.dot_dimension_numbers<[1], [1], [0], [0], [0, 0, 1, 0], [], []>} : vector<8x64xf32>, vector<128x64xf32>, vector<8x128xf32> -> vector<8x128xf32>
    %13 = vector.extract_strided_slice %12 {offsets = [0, 0], sizes = [1, 128], strides = [1, 1]} : vector<8x128xf32> to vector<1x128xf32>
    %cst_6 = arith.constant 1.000000e-24 : f32
    %14 = vector.broadcast %cst_6 : f32 to vector<1x128xf32>
    %15 = arith.maximumf %13, %14 : vector<1x128xf32>
    %16 = math.rsqrt %15 : vector<1x128xf32>
    %cst_7 = arith.constant dense<0.000000e+00> : vector<8x128xf32>
    %17 = tpu.matmul %8, %9, %cst_7 {dimension_numbers = #tpu.dot_dimension_numbers<[1], [1], [0], [0], [0, 0, 1, 0], [], []>} : vector<8x64xf32>, vector<128x64xf32>, vector<8x128xf32> -> vector<8x128xf32>
    %18 = vector.broadcast %16 : vector<1x128xf32> to vector<8x128xf32>
    %19 = arith.mulf %17, %18 : vector<8x128xf32>
    %c0_8 = arith.constant 0 : index
    %c0_9 = arith.constant 0 : index
    %20 = vector.load %arg4[%c0_8, %c0_9] : memref<8x64xf32, #tpu.memory_space<vmem>>, vector<8x64xf32>
    %21 = arith.mulf %20, %20 : vector<8x64xf32>
    %cst_10 = arith.constant dense<0.000000e+00> : vector<8xf32>
    %22 = vector.multi_reduction <add>, %21, %cst_10 [1] : vector<8x64xf32> to vector<8xf32>
    %23 = vector.shape_cast %22 : vector<8xf32> to vector<8x1xf32>
    %cst_11 = arith.constant 1.000000e-24 : f32
    %24 = vector.broadcast %cst_11 : f32 to vector<8x1xf32>
    %25 = arith.maximumf %23, %24 : vector<8x1xf32>
    %26 = math.rsqrt %25 : vector<8x1xf32>
    %27 = vector.broadcast %26 : vector<8x1xf32> to vector<8x64xf32>
    %28 = arith.mulf %20, %27 : vector<8x64xf32>
    %29 = arith.mulf %8, %28 : vector<8x64xf32>
    %cst_12 = arith.constant dense<0.000000e+00> : vector<8xf32>
    %30 = vector.multi_reduction <add>, %29, %cst_12 [1] : vector<8x64xf32> to vector<8xf32>
    %31 = vector.shape_cast %30 : vector<8xf32> to vector<8x1xf32>
    %32 = arith.mulf %31, %31 : vector<8x1xf32>
    %cst_13 = arith.constant 1.000000e+00 : f32
    %33 = vector.broadcast %cst_13 : f32 to vector<8x1xf32>
    %34 = arith.subf %33, %32 : vector<8x1xf32>
    %cst_14 = arith.constant 0.000000e+00 : f32
    %35 = vector.broadcast %cst_14 : f32 to vector<8x1xf32>
    %36 = arith.maximumf %34, %35 : vector<8x1xf32>
    %37 = math.sqrt %36 : vector<8x1xf32>
    %cst_15 = arith.constant -0.87758255 : f32
    %38 = vector.broadcast %cst_15 : f32 to vector<8x1xf32>
    %39 = arith.cmpf ogt, %31, %38 : vector<8x1xf32>
    %cst_16 = arith.constant 0.87758255 : f32
    %40 = vector.broadcast %cst_16 : f32 to vector<8x1xf32>
    %41 = arith.mulf %31, %40 : vector<8x1xf32>
    %cst_17 = arith.constant 0.47942555 : f32
    %42 = vector.broadcast %cst_17 : f32 to vector<8x1xf32>
    %43 = arith.mulf %37, %42 : vector<8x1xf32>
    %44 = arith.subf %41, %43 : vector<8x1xf32>
    %cst_18 = arith.constant 0.239712775 : f32
    %45 = vector.broadcast %cst_18 : f32 to vector<8x1xf32>
    %46 = arith.subf %31, %45 : vector<8x1xf32>
    %47 = arith.select %39, %44, %46 : vector<8x1xi1>, vector<8x1xf32>
    %c128_i32 = arith.constant 128 : i32
    %48 = arith.muli %arg0, %c128_i32 : i32
    %49 = tpu.iota {dimensions = array<i32: 1>} : vector<8x128xi32>
    %50 = vector.broadcast %48 : i32 to vector<8x128xi32>
    %51 = arith.addi %50, %49 : vector<8x128xi32>
    %c0_19 = arith.constant 0 : index
    %c0_20 = arith.constant 0 : index
    %52 = vector.load %arg5[%c0_19, %c0_20] : memref<8x1xi32, #tpu.memory_space<vmem>>, vector<8x1xi32>
    %53 = vector.broadcast %52 : vector<8x1xi32> to vector<8x128xi32>
    %54 = arith.cmpi eq, %51, %53 : vector<8x128xi32>
    %55 = vector.broadcast %47 : vector<8x1xf32> to vector<8x128xf32>
    %56 = arith.subf %19, %55 : vector<8x128xf32>
    %57 = arith.mulf %56, %56 : vector<8x128xf32>
    %cst_21 = arith.constant 0.000000e+00 : f32
    %58 = vector.broadcast %cst_21 : f32 to vector<8x128xf32>
    %59 = arith.subf %58, %57 : vector<8x128xf32>
    %cst_22 = arith.constant 5.000000e-01 : f32
    %60 = vector.broadcast %cst_22 : f32 to vector<8x128xf32>
    %61 = arith.mulf %59, %60 : vector<8x128xf32>
    %62 = math.exp %61 : vector<8x128xf32>
    %cst_23 = arith.constant 1.200000e+00 : f32
    %63 = vector.broadcast %cst_23 : f32 to vector<8x128xf32>
    %64 = arith.mulf %63, %62 : vector<8x128xf32>
    %65 = arith.mulf %64, %19 : vector<8x128xf32>
    %66 = arith.addf %65, %64 : vector<8x128xf32>
    %cst_24 = arith.constant 1.000000e+00 : f32
    %67 = vector.broadcast %cst_24 : f32 to vector<8x128xf32>
    %68 = arith.subf %66, %67 : vector<8x128xf32>
    %69 = vector.shape_cast %47 : vector<8x1xf32> to vector<8x1xf32>
    %70 = vector.broadcast %69 : vector<8x1xf32> to vector<8x128xf32>
    %71 = arith.select %54, %70, %68 : vector<8x128xi1>, vector<8x128xf32>
    %cst_25 = arith.constant 6.400000e+01 : f32
    %72 = vector.broadcast %cst_25 : f32 to vector<8x128xf32>
    %73 = arith.mulf %72, %71 : vector<8x128xf32>
    %c0_26 = arith.constant 0 : index
    %c0_27 = arith.constant 0 : index
    %74 = vector.load %arg6[%c0_26, %c0_27] : memref<8x128xf32, #tpu.memory_space<vmem>>, vector<8x128xf32>
    tpu.vector_store %arg6[%c0_26, %c0_27], %73 {strides = array<i32>} : memref<8x128xf32, #tpu.memory_space<vmem>>, vector<8x128xf32>,
    return
  }
  func.func @transform_0(%arg0: i32, %arg1: i32) -> (i32, i32) {
    %c0_i32 = arith.constant 0 : i32
    %c0_i32_0 = arith.constant 0 : i32
    return %arg1, %c0_i32 : i32, i32
  }
  func.func @transform_1(%arg0: i32, %arg1: i32) -> (i32, i32) {
    %c0_i32 = arith.constant 0 : i32
    %c0_i32_0 = arith.constant 0 : i32
    return %arg0, %c0_i32 : i32, i32
  }
  func.func @transform_2(%arg0: i32, %arg1: i32) -> (i32, i32) {
    %c0_i32 = arith.constant 0 : i32
    %c0_i32_0 = arith.constant 0 : i32
    return %arg1, %c0_i32 : i32, i32
  }
  func.func @transform_3(%arg0: i32, %arg1: i32) -> (i32, i32) {
    %c0_i32 = arith.constant 0 : i32
    %c0_i32_0 = arith.constant 0 : i32
    return %arg1, %c0_i32 : i32, i32
  }
  func.func @transform_4(%arg0: i32, %arg1: i32) -> (i32, i32) {
    %c0_i32 = arith.constant 0 : i32
    return %arg1, %arg0 : i32, i32
  }
}

</mosaic_0001>

<bundles_post_ra>
// kernel: tpu_custom_call.1
= control target key start
LH: loop header
LB: loop body
LE: loop exit
PB: predicated region body
PF: predicated region fallthrough
CT: control target
= control target key end

     0   :  { %9 = vsyncpa [#allocation3], 0  ;;  %s1402_s0 = inlined_call_operand.vmem [shape: f32[16,64], index: 0, kind: input, shape index: {}]   ;;  %s1403_s1 = inlined_call_operand.vmem [shape: f32[512,64], index: 1, kind: input, shape index: {}]   ;;  %s1404_s2 = inlined_call_operand.vmem [shape: f32[16,64], index: 2, kind: input, shape index: {}]   ;;  %s1405_s3 = inlined_call_operand.vmem [shape: s32[16,1], index: 3, kind: input, shape index: {}]   ;;  %s1406_s4 = inlined_call_operand.hbm [shape: f32[16,512], index: 4, kind: output, shape index: {}]  }
   0x1   :  { %11 = vsyncpa [#allocation3 + $0x1], 0  ;;  %s1164_s15 = smov 0   ;;  %s1166_s16 = smov 0  }
   0x2   :  { %s1168_s17 = smov 0   ;;  %s1170_s18 = smov 0  }
   0x3   :  { %s1172_s19 = smov 0   ;;  %s1174_s20 = smov 0  }
   0x4   :  { %s1176_s21 = smov 0   ;;  %s1178_s22 = smov 0  }
   0x5 LB: > { %s728_s23 = sadd.s32 4294967295, %s1131_s22   ;;  %s729_s24 = sadd.s32 4294967294, %s1131_s22   ;;  %s1131_s22 = sphi %s1178_s22, %s17_s22   ;;  %s1127_s21 = sphi %s1176_s21, %s1417_s21   ;;  %s1123_s20 = sphi %s1174_s20, %s1416_s20   ;;  %s1119_s19 = sphi %s1172_s19, %s1415_s19   ;;  %s1115_s18 = sphi %s1170_s18, %s1414_s18   ;;  %s1111_s17 = sphi %s1168_s17, %s1413_s17   ;;  %s1107_s16 = sphi %s1166_s16, %s1412_s16   ;;  %s1103_s15 = sphi %s1164_s15, %s1411_s15  }
   0x6   : > { %s26_s25 = sadd.s32 1, %s1123_s20  ;;  %s29_s26 = sadd.s32 1, %s1127_s21 }
   0x7   : > { %p27_p0 = scmp.ge.s32.totalorder %s26_s25, 2  ;;  %p152_p1 = scmp.ne.s32.totalorder %s1111_s17, %s1107_s16 }
   0x8   : > { %p153_p2 = scmp.eq.s32.totalorder %s728_s23, 7  ;;  %p158_p5 = scmp.ne.s32.totalorder %s1107_s16, %s1103_s15 }
   0x9   : > { %s1419_s25 = smov (%p27_p0, %s26_s25), 0  ;;  %s1421_s26 = smov (!%p27_p0, %s29_s26), %s1127_s21 }
   0xa   : > { %s137_s27 = ssub.s32 %s1123_s20, %s1419_s25  ;;  %p1215_p3 = por %p153_p2, %p152_p1 }
   0xb   : > { %p31_p4 = scmp.ge.s32.totalorder %s1421_s26, 4  ;;  %p159_p6 = scmp.eq.s32.totalorder %s729_s24, 7 }
   0xc   : > { %p732_p7 = scmp.ge.s32.totalorder %s1131_s22, 1  ;;  %p207_p9 = scmp.lt.s32.totalorder %s1131_s22, 9 }
   0xd   : > { %s1423_s26 = smov (%p31_p4, %s1421_s26), 0  ;;  %p1224_p8 = por %p159_p6, %p158_p5 }
   0xe   : > { %s138_s30 = ssub.s32 %s1127_s21, %s1423_s26  ;;  %s142_s5 = sadd.s32 1, %s1111_s17 }
   0xf   : > { %s139_s6 = sor.u32 %s138_s30, %s137_s27  ;;  %p208_p10 = pnand %p732_p7, %p207_p9 }
  0x10   : > { %p140_p11 = scmp.eq.s32.totalorder %s139_s6, 0  ;;  %p245_p12 = scmp.lt.s32.totalorder (!%p208_p10), %s1115_s18, 1  ;;  %v1133_v0 = vmov (!%p208_p10), 0.0|0.0   ;;  %vm1134_vm0 = vmmov (!%p208_p10), 0   ;;  %v1135_v1 = vmov (!%p208_p10), 0.0   ;;  %vm265_vm1 = vcmask (!%p208_p10), 523264  }
  0x11   : > { %211 = sbr.rel (%p208_p10) target bundleno = 449 (0x1c1), region = 36  ;;  %s735_s8 = sshll.u32 (!%p208_p10), %s1119_s19, 4  ;;  %885 = vmatprep.subr.bf16.mxu0 (!%p208_p10), %v1133_v0  ;;  %917 = vmatprep.subr.bf16.mxu1 (!%p208_p10), %v1133_v0  ;;  %vm1268_vm2 = vmpackc.low (!%p208_p10), %vm265_vm1, %vm265_vm1  ;;  %v1136_v43 = vmov (!%p208_p10), 0   ;;  %v1137_v58 = vmov (!%p208_p10), 1.0  }
  0x12   : > { %s1233_s7 = scalar_select %p140_p11, %s1111_s17, %s142_s5  }
  0x13   : > { %p250_p13 = scmp.lt.s32.totalorder (!%p208_p10), %s735_s8, 63  ;;  %847 = vmatprep.mubr.msk.f32.mxu0 (!%p208_p10), %vm1134_vm0, %v1135_v1  ;;  %882 = vmatprep.mubr.msk.f32.mxu1 (!%p208_p10), %vm1134_vm0, %v1135_v1  ;;  %s242_s12 = sand.u32 (!%p208_p10), 1, %s1107_s16  }
  0x14   : > { %1025 = vset.pattern.permute.xlu1 (!%p208_p10), %v1136_v43  ;;  %1026 = vset.pattern.permute.xlu0 (!%p208_p10), %v1136_v43  ;;  %s777_s14 = sshll.u32 (!%p208_p10), %s1115_s18, 2 }
  0x15   : > { %s616_s23 = sadd.s32 (!%p208_p10), %s1119_s19, %s777_s14 }
  0x18   : > { %s246_s9 = scalar_select %p245_p12, %s1115_s18, 1 }
  0x19   : > { %s1425_s8 = smov (!%p250_p13, %s735_s8), 63  ;;  %s605_s18 = scalar_lea.sflag [#allocation3], %s242_s12 }
  0x1a   : > { %s1240_s10 = sshll.u32 %s246_s9, 3  ;;  %s736_s27 = sshll.u32 %s1425_s8, 3 }
  0x1b   : > { %s248_s13 = scalar_lea.vmem %s1402_s0, %s1240_s10  ;;  %s258_s24 = scalar_lea.vmem %s1404_s2, %s1240_s10 }
  0x1c   : > { %v1250_v2 = vld [vmem:[%s248_s13] sm:$0xff]  ;;  %s1261_s6 = scalar_lea.vmem %s1403_s1, %s736_s27  ;;  %s262_s11 = scalar_lea.vmem %s1405_s3, %s1240_s10 }
  0x1d   : > { %v1252_v3 = vld [vmem:[%s258_s24] sm:$0xff]  ;;  %v264_v4 = vmul.f32 %v1250_v2, %v1250_v2  ;;  %v273_v7 = vld [vmem:[%s1261_s6 + $0x8] sm:$0xff]  ;;  %v274_v12 = vld [vmem:[%s1261_s6 + $0x10] sm:$0xff]  ;;  %s774_s10 = sshll.u32 %s1119_s19, 7  ;;  %s733_s13 = sshll.u32 %s242_s12, 3 }
  0x1e   : > { %v554_v5 = vmul.f32 %v1252_v3, %v1252_v3  ;;  %v272_v6 = vld [vmem:[%s1261_s6] sm:$0xff]  ;;  %v289_v10 = vmul.f32 %v273_v7, %v273_v7  ;;  %v275_v13 = vld [vmem:[%s1261_s6 + $0x18] sm:$0xff]  ;;  %v290_v17 = vmul.f32 %v274_v12, %v274_v12  ;;  %v277_v22 = vld [vmem:[%s1261_s6 + $0x28] sm:$0xff]  ;;  %s778_s24 = sshll.u32 %s616_s23, 7  ;;  %s244_s27 = scalar_lea.vmem [#allocation2], %s733_s13 }
  0x1f   : > { %v266_v8 = vsel %vm265_vm1, %v264_v4, 0.0  ;;  %v288_v9 = vmul.f32 %v272_v6, %v272_v6  ;;  %v918_v16 = vpack.c.bf16 %v273_v7, %v272_v6  ;;  %v291_v18 = vmul.f32 %v275_v13, %v275_v13  ;;  %v276_v21 = vld [vmem:[%s1261_s6 + $0x20] sm:$0xff]  ;;  %v278_v27 = vld [vmem:[%s1261_s6 + $0x30] sm:$0xff]  ;;  %v279_v28 = vld [vmem:[%s1261_s6 + $0x38] sm:$0xff]  ;;  %s620_s30 = sshll.u32 %s244_s27, 4  ;;  %s1349_s8 = scalar_lea.hbm %s1406_s4, %s778_s24  ;;  %s1351_s30 = int_to_ptr.vmem [resolvable:$true] %s620_s30 }
  0x20   : > { %267 = vadd.xlane.f32.xlu0 %v266_v8  ;;  %v555_v14 = vsel %vm265_vm1, %v554_v5, 0.0  ;;  %v922_v20 = vpack.c.bf16 %v275_v13, %v274_v12  ;;  %v292_v23 = vmul.f32 %v276_v21, %v276_v21  ;;  %v293_v24 = vmul.f32 %v277_v22, %v277_v22  ;;  %v280_v33 = vld [vmem:[%s1261_s6 + $0x40] sm:$0xff]  ;;  %v281_v34 = vld [vmem:[%s1261_s6 + $0x48] sm:$0xff]  ;;  %v282_v39 = vld [vmem:[%s1261_s6 + $0x50] sm:$0xff]  ;;  %s1037_s19 = scalar_lea.vmem %s1351_s30, 128  ;;  %s1138_s9 = smov [#allocation2]  }
  0x21   : > { %v886_v15 = vpack.c.bf16 %v289_v10, %v288_v9  ;;  %920 = vmatpush3.bf16.xpose.msk.msra.mxu1 %vm1268_vm2, %v918_v16  ;;  %v890_v19 = vpack.c.bf16 %v291_v18, %v290_v17  ;;  %v926_v26 = vpack.c.bf16 %v277_v22, %v276_v21  ;;  %v294_v29 = vmul.f32 %v278_v27, %v278_v27  ;;  %v283_v40 = vld [vmem:[%s1261_s6 + $0x58] sm:$0xff]  ;;  %v284_v46 = vld [vmem:[%s1261_s6 + $0x60] sm:$0xff]  ;;  %v285_v47 = vld [vmem:[%s1261_s6 + $0x68] sm:$0xff]  ;;  %p1038_p0 = scmp.ne.s32.totalorder %s1351_s30, %s1037_s19 }
  0x22   : > { %921 = vmatprep.subr.bf16.mxu1 %v1133_v0  ;;  %v894_v25 = vpack.c.bf16 %v293_v24, %v292_v23  ;;  %v295_v30 = vmul.f32 %v279_v28, %v279_v28  ;;  %v930_v32 = vpack.c.bf16 %v279_v28, %v278_v27  ;;  %v296_v35 = vmul.f32 %v280_v33, %v280_v33  ;;  %v286_v52 = vld [vmem:[%s1261_s6 + $0x70] sm:$0xff]  ;;  %v287_v53 = vld [vmem:[%s1261_s6 + $0x78] sm:$0xff]  ;;  %v586_v7 = vld [vmem:[%s262_s11] sm:$0xff]  ;;  %s1041_s11 = sshll.u32 %s1138_s9, 4  ;;  %s1042_s11 = int_to_ptr.vmem [resolvable:$false] %s1041_s11 }
  0x23   : > { %888 = vmatpush3.bf16.xpose.msk.msra.mxu0 %vm1268_vm2, %v886_v15  ;;  %v297_v36 = vmul.f32 %v281_v34, %v281_v34  ;;  %v934_v38 = vpack.c.bf16 %v281_v34, %v280_v33  ;;  %v298_v41 = vmul.f32 %v282_v39, %v282_v39  ;;  %v299_v42 = vmul.f32 %v283_v40, %v283_v40  ;;  %p1039_p1 = pnand %p1038_p0, %p1215_p3  ;;  %p1044_p4 = scmp.lt.s32.totalorder %s1351_s30, %s1042_s11 }
  0x24   : > { %556 = vadd.xlane.f32.xlu0 %v555_v14  ;;  %889 = vmatprep.subr.bf16.mxu0 %v1133_v0  ;;  %v898_v31 = vpack.c.bf16 %v295_v30, %v294_v29  ;;  %v938_v45 = vpack.c.bf16 %v283_v40, %v282_v39  ;;  %v300_v48 = vmul.f32 %v284_v46, %v284_v46  ;;  %v548_v15 = vlaneseq }
  0x25   : > { %v902_v37 = vpack.c.bf16 %v297_v36, %v296_v35  ;;  %v906_v44 = vpack.c.bf16 %v299_v42, %v298_v41  ;;  %v301_v49 = vmul.f32 %v285_v47, %v285_v47  ;;  %v942_v51 = vpack.c.bf16 %v285_v47, %v284_v46  ;;  %p1040_p2 = pneg %p1039_p1 }
  0x26   : > { %v302_v54 = vmul.f32 %v286_v52, %v286_v52  ;;  %v303_v55 = vmul.f32 %v287_v53, %v287_v53  ;;  %v946_v57 = vpack.c.bf16 %v287_v53, %v286_v52  ;;  %v549_v18 = vshrl.u32 %v548_v15, 7 }
  0x27   : > { %v910_v50 = vpack.c.bf16 %v301_v49, %v300_v48  ;;  %v583_v36 = vand.u32 127, %v548_v15 }
  0x28   : > { %v914_v56 = vpack.c.bf16 %v303_v55, %v302_v54 }
  0x29   : > { %924 = vmatpush3.bf16.xpose.msk.msra.mxu1 %vm1268_vm2, %v922_v20  ;;  %v550_v20 = vsub.s32 0, %v549_v18 }
  0x2a   : > { %925 = vmatprep.subr.bf16.mxu1 %v1133_v0 }
  0x2b   : > { %892 = vmatpush3.bf16.xpose.msk.msra.mxu0 %vm1268_vm2, %v890_v19 }
  0x2c   : > { %893 = vmatprep.subr.bf16.mxu0 %v1133_v0 }
  0x31   : > { %928 = vmatpush3.bf16.xpose.msk.msra.mxu1 %vm1268_vm2, %v926_v26 }
  0x32   : > { %929 = vmatprep.subr.bf16.mxu1 %v1133_v0 }
  0x33   : > { %896 = vmatpush3.bf16.xpose.msk.msra.mxu0 %vm1268_vm2, %v894_v25 }
  0x34   : > { %897 = vmatprep.subr.bf16.mxu0 %v1133_v0 }
  0x39   : > { %932 = vmatpush3.bf16.xpose.msk.msra.mxu1 %vm1268_vm2, %v930_v32 }
  0x3a   : > { %933 = vmatprep.subr.bf16.mxu1 %v1133_v0 }
  0x3b   : > { %900 = vmatpush3.bf16.xpose.msk.msra.mxu0 %vm1268_vm2, %v898_v31 }
  0x3c   : > { %901 = vmatprep.subr.bf16.mxu0 %v1133_v0 }
  0x41   : > { %936 = vmatpush3.bf16.xpose.msk.msra.mxu1 %vm1268_vm2, %v934_v38 }
  0x42   : > { %937 = vmatprep.subr.bf16.mxu1 %v1133_v0 }
  0x43   : > { %904 = vmatpush3.bf16.xpose.msk.msra.mxu0 %vm1268_vm2, %v902_v37  ;;  %v584_v37 = vstv %s774_s10  ;;  %s1043_s10 = scalar_lea.vmem %s1042_s11, 256 }
  0x44   : > { %905 = vmatprep.subr.bf16.mxu0 %v1133_v0  ;;  %v585_v40 = vadd.s32 %v584_v37, %v583_v36  ;;  %p1045_p5 = scmp.lt.s32.totalorder %s1043_s10, %s1037_s19 }
  0x46   : > { %p1046_p6 = por %p1045_p5, %p1044_p4 }
  0x48   : > { %p1047_p7 = pnand %p1046_p6, %p1040_p2 }
  0x49   : > { %940 = vmatpush3.bf16.xpose.msk.msra.mxu1 %vm1268_vm2, %v938_v45 }
  0x4a   : > { %941 = vmatprep.subr.bf16.mxu1 %v1133_v0 }
  0x4b   : > { %908 = vmatpush3.bf16.xpose.msk.msra.mxu0 %vm1268_vm2, %v906_v44 }
  0x4c   : > { %909 = vmatprep.subr.bf16.mxu0 %v1133_v0 }
  0x51   : > { %944 = vmatpush3.bf16.xpose.msk.msra.mxu1 %vm1268_vm2, %v942_v51 }
  0x52   : > { %945 = vmatprep.subr.bf16.mxu1 %v1133_v0 }
  0x53   : > { %912 = vmatpush3.bf16.xpose.msk.msra.mxu0 %vm1268_vm2, %v910_v50 }
  0x54   : > { %913 = vmatprep.subr.bf16.mxu0 %v1133_v0 }
  0x59   : > { %948 = vmatpush3.bf16.xpose.msk.msra.mxu1 %vm1268_vm2, %v946_v57 }
  0x5b   : > { %916 = vmatpush3.bf16.xpose.msk.msra.mxu0 %vm1268_vm2, %v914_v56 }
  0x62   : > { %848 = vmatmul.mubr.msk.f32.vlgmr.msra.gmra.mrb[0].mxu0 %vm265_vm1, %v1137_v58 }
  0xad   : > { %v268_v59 = vpop.xlane.xlu0 %267 }
  0xae   : > { %v269_v60 = vmax.f32 %v268_v59, 1e-24 }
  0xb0   : > { %1027 = vrsqrt.f32 %v269_v60 }
  0xb1   : > { %v557_v61 = vpop.xlane.xlu0 %556 }
  0xb2   : > { %v558_v62 = vmax.f32 %v557_v61, 1e-24 }
  0xb4   : > { %1029 = vrsqrt.f32 %v558_v62 }
  0xba   : > { %v1028_v63 = vpop.eup %1027 }
  0xbb   : > { %v271_v0 = vmul.f32 %v1028_v63, %v1250_v2 }
  0xbd   : > { %883 = vmatmul.mubr.msk.f32.vlgmr.msra.gmra.mrb[0].mxu1 %vm265_vm1, %v271_v0 }
  0xbe   : > { %v1030_v1 = vpop.eup %1029 }
  0xbf   : > { %v560_v4 = vmul.f32 %v1030_v1, %v1252_v3 }
  0xc1   : > { %v561_v5 = vmul.f32 %v560_v4, %v271_v0 }
  0xc3   : > { %v562_v6 = vsel %vm265_vm1, %v561_v5, 0.0 }
  0xc4   : > { %563 = vadd.xlane.f32.xlu1 %v562_v6 }
  0xd5   : > { %588 = vperm.xlu1 %1025, %v586_v7  }
 0x135   : > { %v421_v8 = vpop.f32.mrb[0].mxu0 }
 0x136   : > { %v849_v9 = vpop.f32.mrb[1].mxu0  ;;  %v425_v13 = vmax.f32 %v421_v8, 1e-24 }
 0x151   : > { %v564_v10 = vpop.xlane.xlu1 %563 }
 0x152   : > { %v565_v11 = vmul.f32 %v564_v10, %v564_v10  ;;  %v576_v23 = vmul.f32 0.87758255, %v564_v10  ;;  %v773_v26 = vadd.f32 -0.23971277, %v564_v10  ;;  %vm575_vm5 = vcmp.gt.f32.partialorder %v564_v10, -0.87758255 }
 0x154   : > { %v566_v2 = vsub.f32 1.0, %v565_v11 }
 0x155   : > { %v589_v42 = vpop.permute.xlu1 %588 }
 0x156   : > { %v567_v12 = vmax.f32 %v566_v2, 0.0  ;;  %vm590_vm6 = vcmp.eq.s32.totalorder %v585_v40, %v589_v42 }
 0x158   : > { %1031 = vrsqrt.f32 %v567_v12  ;;  %vm570_vm3 = vcmp.eq.f32.partialorder %v567_v12, inf  ;;  %v573_v17 = vand.u32 2147483648, %v567_v12  ;;  %vm572_vm4 = vcmp.eq.f32.partialorder %v567_v12, 0.0 }
 0x159   : > { %1033 = vrsqrt.f32 %v425_v13 }
 0x162   : > { %v1032_v14 = vpop.eup %1031 }
 0x163   : > { %v569_v3 = vmul.f32 %v1032_v14, %v567_v12  ;;  %v1034_v21 = vpop.eup %1033 }
 0x164   : > { %v551_v24 = vrot.slane %v1034_v21, %v550_v20 }
 0x165   : > { %v571_v16 = vsel %vm570_vm3, %v567_v12, %v569_v3 }
 0x166   : > { %v574_v19 = vsel %vm572_vm4, %v573_v17, %v571_v16 }
 0x167   : > { %v577_v22 = vmul.f32 0.47942555, %v574_v19 }
 0x169   : > { %v578_v25 = vsub.f32 %v576_v23, %v577_v22 }
 0x16b   : > { %v580_v30 = vsel %vm575_vm5, %v578_v25, %v773_v26 }
 0x190   : > { %v544_v27 = vpop.f32.mrb[0].mxu1 }
 0x191   : > { %v552_v28 = vmul.f32 %v551_v24, %v544_v27  ;;  %v884_v29 = vpop.f32.mrb[1].mxu1 }
 0x193   : > { %v591_v31 = vsub.f32 %v552_v28, %v580_v30 }
 0x195   : > { %v592_v32 = vmul.f32 %v591_v31, %v591_v31 }
 0x197   : > { %v593_v33 = vsub.f32 0.0, %v592_v32 }
 0x199   : > { %v594_v34 = vmul.f32 0.5, %v593_v33 }
 0x19b   : > { %v595_v35 = vmul.f32 1.442695, %v594_v34 }
 0x19d   : > { %1035 = vpow2.f32 %v595_v35 }
 0x1a7   : > { %v1036_v38 = vpop.eup %1035 }
 0x1a8   : > { %v597_v39 = vmul.f32 1.2, %v1036_v38 }
 0x1aa   : > { %v598_v41 = vmul.f32 %v597_v39, %v552_v28 }
 0x1ac   : > { %v599_v43 = vadd.f32 %v598_v41, %v597_v39 }
 0x1ae   : > { %v775_v44 = vadd.f32 -1.0, %v599_v43 }
 0x1b0   : > { %v601_v45 = vsel %vm590_vm6, %v580_v30, %v775_v44 }
 0x1b1   : > { %v602_v46 = vmul.f32 64.0, %v601_v45 }
 0x1b3   : > { %603 = vst [vmem:[%s244_s27] sm:$0xff] %v602_v46 }
 0x1b4   : > { %1050 = shalt.err (!%p1047_p7)
}
 0x1b5   : > { %s1051_s12 = scalar_lea.hbm %s1349_s8, 128  ;;  %s1055_s23 = scalar_lea.hbm %s1406_s4, 1024 }
 0x1b6   : > { %p1052_p9 = scmp.ne.s32.totalorder %s1349_s8, %s1051_s12  ;;  %p1056_p12 = scmp.lt.u32.totalorder %s1349_s8, %s1406_s4 }
 0x1b7   : > { %p1057_p13 = scmp.lt.u32.totalorder %s1055_s23, %s1051_s12  ;;  %p1059_p1 = scmp.lt.u32.totalorder %s1051_s12, %s1349_s8 }
 0x1b8   : > { %p1053_p10 = pnand %p1052_p9, %p1215_p3 }
 0x1b9   : > { %p1058_p0 = por %p1057_p13, %p1056_p12 }
 0x1ba   : > { %p1054_p11 = pneg %p1053_p10 }
 0x1bb   : > { %p1060_p2 = por %p1059_p1, %p1058_p0 }
 0x1bd   : > { %p1061_p4 = pnand %p1060_p2, %p1054_p11 }
 0x1bf   : > { %1064 = shalt.err (!%p1061_p4)
}
 0x1c0   : > { %949 = dma.vmem_to_hbm [thread:$0]  (%p1215_p3), %s1351_s30, 128, %s1349_s8, %s605_s18  }
 0x1c1 PF: > { %p955_p5 = scmp.ge.s32.totalorder %s1131_s22, 2  ;;  %s632_s5 = sand.u32 1, %s1103_s15  }
 0x1c2   : > { %s633_s6 = scalar_lea.sflag [#allocation3], %s632_s5 }
 0x1c3   : > { %p952_p6 = pnand %p955_p5, %p1224_p8 }
 0x1c5   : > { %1098 = dma.done.wait (!%p952_p6), %s633_s6, 128  }
 0x1c6   : > { %1100 = vsyncadd (!%p952_p6), %s633_s6, 4294967168  ;;  %s17_s22 = sadd.s32 1, %s1131_s22   ;;  %s1411_s15 = smov %s1107_s16 }
 0x1c7   : > { %p14_p7 = scmp.ge.s32.totalorder %s17_s22, 10   ;;  %s1412_s16 = smov %s1111_s17 }
 0x1c8   : > { %s1413_s17 = smov %s1233_s7  ;;  %s1414_s18 = smov %s1123_s20 }
 0x1c9   : > { %s1415_s19 = smov %s1127_s21  ;;  %s1416_s20 = smov %s1419_s25 }
 0x1ca   : > { %s1417_s21 = smov %s1423_s26  ;;  %16 = sbr.rel (!%p14_p7) target bundleno = 5 (0x5), region = 80 }
 0x1d1   :  { %638 = vsyncpa [#allocation3], 1 }
 0x1d2   :  { %640 = vsyncpa [#allocation3 + $0x1], 1 }

</bundles_post_ra>
